<compile_context>
chip_gen: v6e
topology: v6e:2x2x1
jax: 0.10.0
libtpu: 0.0.40
codegen_flags: <defaults>
</compile_context>

<pallas_src>
import jax
import jax.numpy as jnp
from jax.experimental import pallas as pl
from jax.experimental.pallas import tpu as pltpu


def _hbm_passthrough_kernel(feat_hbm, out_hbm, sem):
    # One full-buffer HBM->HBM DMA: the DMA engine moves the bytes, the
    # TensorCore only issues + waits.  No vld/vst slots, no VMEM staging,
    # no per-tile grid overhead.
    copy = pltpu.make_async_copy(feat_hbm, out_hbm, sem)
    copy.start()
    copy.wait()


def _pallas_passthrough(features: jax.Array) -> jax.Array:
    """Identity pass-through of `features` via a single HBM->HBM DMA."""
    return pl.pallas_call(
        _hbm_passthrough_kernel,
        out_shape=jax.ShapeDtypeStruct(features.shape, features.dtype),
        in_specs=[pl.BlockSpec(memory_space=pl.ANY)],   # raw HBM ref, no auto-DMA
        out_specs=pl.BlockSpec(memory_space=pl.ANY),    # output stays in HBM
        scratch_shapes=[pltpu.SemaphoreType.DMA],       # DMA completion semaphore
    )(features)


class DummyBackbone:
    """JAX/Pallas equivalent of the PyTorch DummyBackbone module."""

    def __init__(self):
        self.features = None

    def set_out_features(self, new_features):
        self.features = new_features

    def forward(self, _x):
        # Matches PyTorch: the forward input is ignored, the stored features
        # are returned.  (Returning self.features directly would be literally
        # free and semantically identical; the kernel below keeps an explicit
        # Pallas pass-through while avoiding any VMEM round trip or
        # wrapper-side reshaping/padding/casting.)
        if self.features is None:
            return None
        return _pallas_passthrough(self.features)

    __call__ = forward


if __name__ == "__main__":
    key = jax.random.PRNGKey(0)
    k_feat, k_x = jax.random.split(key)

    # Backbone-style feature map (NCHW) set by an upstream component via
    # set_out_features.
    features = jax.random.normal(k_feat, (2, 4, 16, 16), dtype=jnp.float32)
    # Forward input — deliberately ignored by the module.
    x = jax.random.normal(k_x, (2, 3, 32, 32), dtype=jnp.float32)

    backbone = DummyBackbone()
    backbone.set_out_features(features)

    out = backbone(x)
    out = jax.block_until_ready(out)

    assert out.shape == features.shape
    assert out.dtype == features.dtype
    assert bool(jnp.all(out == features))
    print("KERNEL_OK")
</pallas_src>

<mosaic_0001>
module attributes {stable_mosaic.version = 11 : i64} {
  func.func @_hbm_passthrough_kernel(%arg0: memref<2x4x16x16xf32, #tpu.memory_space<any>>, %arg1: memref<2x4x16x16xf32, #tpu.memory_space<any>>, %arg2: memref<!tpu.dma_semaphore, #tpu.memory_space<semaphore_mem>>) attributes {dimension_semantics = [], scalar_prefetch = 0 : i64, scratch_operands = 1 : i64, tpu.core_type = #tpu.core_type<tc>} {
    tpu.enqueue_dma source(%arg0 : memref<2x4x16x16xf32, #tpu.memory_space<any>>) target(%arg1 : memref<2x4x16x16xf32, #tpu.memory_space<any>>) target_semaphore(%arg2 : memref<!tpu.dma_semaphore, #tpu.memory_space<semaphore_mem>>)
    tpu.wait_dma2 semaphore(%arg2 : memref<!tpu.dma_semaphore, #tpu.memory_space<semaphore_mem>>) src(%arg0 : memref<2x4x16x16xf32, #tpu.memory_space<any>>) dst(%arg1 : memref<2x4x16x16xf32, #tpu.memory_space<any>>)
    return
  }
}

</mosaic_0001>

<bundles_post_ra>
// kernel: tpu_custom_call.1
= control target key start
LH: loop header
LB: loop body
LE: loop exit
PB: predicated region body
PF: predicated region fallthrough
CT: control target
= control target key end

     0   :  { %s30_s6 = smov [#allocation2]   ;;  %s31_s7 = smov 131072   ;;  %s49_s0 = inlined_call_operand.hbm [shape: f32[2,4,16,16], index: 0, kind: input, shape index: {}]   ;;  %s50_s1 = inlined_call_operand.hbm [shape: f32[2,4,16,16], index: 1, kind: output, shape index: {}]  }
   0x1   :  { %s32_s8 = smov 0  }
   0x2   :  { %12 = dma.general %s49_s0, 2048, %s50_s1, %s30_s6, %s31_s7, [#allocation4], %s32_s8, 0  }
   0x3   :  { %28 = dma.done.wait [#allocation2], 2048 }
   0x4   :  { %29 = vsyncadd [#allocation2], 4294965248 }
   0x5   :  { %18 = vsyncmov [#allocation2] }
   0x8   :  { %s19_s13 = vpop.sfrf %18 }
   0x9   :  { %p24_p0 = scmp.ne.s32.totalorder %s19_s13, 0 }
   0xb   :  { %23 = shalt.err (%p24_p0)  }

</bundles_post_ra>
